<compile_context>
chip_gen: v6e
topology: v6e:2x2x1
jax: 0.10.0
libtpu: 0.0.40
codegen_flags: <defaults>
</compile_context>

<pallas_src>
import jax
import jax.numpy as jnp
from jax.experimental import pallas as pl
from jax.experimental.pallas import tpu as pltpu


def _round_up(x, m):
    return ((x + m - 1) // m) * m


def _reward_kernel(x_ref, w_ref, o_ref):
    # x_ref: [TILE_B, F] streamed slab, w_ref: [1, F] resident weight row,
    # o_ref: [TILE_B, 1].  Accumulate in f32 regardless of input dtype.
    x = x_ref[...].astype(jnp.float32)
    w = w_ref[...].astype(jnp.float32)                  # broadcasts over rows
    acc = jnp.sum(x * w, axis=-1, keepdims=True)        # [TILE_B, 1]
    o_ref[...] = jax.nn.sigmoid(acc).astype(o_ref.dtype)


def _reward_call(x, w_row, tile, out_dtype):
    """Run the kernel on x whose batch is an exact multiple of `tile`."""
    Bp, F = x.shape
    itemsize = jnp.dtype(x.dtype).itemsize
    cost = pl.CostEstimate(
        flops=2 * Bp * F,
        transcendentals=Bp,
        bytes_accessed=Bp * F * itemsize + F * 4 + Bp * jnp.dtype(out_dtype).itemsize,
    )
    return pl.pallas_call(
        _reward_kernel,
        out_shape=jax.ShapeDtypeStruct((Bp, 1), out_dtype),
        grid=(Bp // tile,),
        in_specs=[
            pl.BlockSpec((tile, F), lambda i: (i, 0)),   # streamed + double-buffered
            pl.BlockSpec((1, F), lambda i: (0, 0)),      # weight stays resident in VMEM
        ],
        out_specs=pl.BlockSpec((tile, 1), lambda i: (i, 0)),
        compiler_params=pltpu.CompilerParams(
            dimension_semantics=("parallel",),           # shard batch tiles across TCs
        ),
        cost_estimate=cost,
    )(x, w_row)


def reward_forward(features, weight, *, tile_b=2048):
    """sigmoid(features @ weight), matching Reward.forward.

    Args:
        features: [batch, feature_size]
        weight:   [feature_size, 1]  (== nn.Linear(feature_size, 1, bias=False).weight.T)
        tile_b:   batch-tile size (rounded to a multiple of 8).  Default 2048 keeps the
                  double-buffered input well under v7x's scoped VMEM; it may be raised
                  on v5e/v6e for fewer grid steps, though the kernel is HBM-bound either
                  way.
    Returns:
        [batch, 1]
    """
    B, F = features.shape
    assert weight.shape == (F, 1)
    out_dtype = features.dtype

    # NOTE: if the model tolerates it, casting `features` to bfloat16 upstream halves
    # the HBM bytes read (~2x wall-clock); f32 accumulation is kept inside the kernel.
    w_row = weight.reshape(1, F)

    # Batch tile: multiple of 8 (sublane), no larger than the (rounded-up) batch.
    tile = max(8, _round_up(min(tile_b, _round_up(B, 8)), 8))

    # Bulk part: exact multiple of the tile, streamed with zero host-side copies.
    main = (B // tile) * tile
    outs = []
    if main > 0:
        outs.append(_reward_call(features[:main], w_row, tile, out_dtype))

    # Ragged tail: small slice, padded up to a multiple of 8 only (cheap).
    rem = B - main
    if rem > 0:
        rem_pad = _round_up(rem, 8)
        tail = features[main:]
        if rem_pad != rem:
            tail = jnp.pad(tail, ((0, rem_pad - rem), (0, 0)))
        outs.append(_reward_call(tail, w_row, rem_pad, out_dtype)[:rem])

    return outs[0] if len(outs) == 1 else jnp.concatenate(outs, axis=0)


if __name__ == "__main__":
    feature_size = 768

    key = jax.random.PRNGKey(0)
    k_x, k_w, k_x2, k_x3 = jax.random.split(key, 4)

    # Deterministic init mimicking nn.Linear default: U(-1/sqrt(F), 1/sqrt(F))
    bound = 1.0 / (feature_size ** 0.5)
    weight = jax.random.uniform(
        k_w, (feature_size, 1), dtype=jnp.float32, minval=-bound, maxval=bound
    )

    # 1) Small batch, single-call path.
    batch = 8
    features = jax.random.normal(k_x, (batch, feature_size), dtype=jnp.float32)
    out = jax.block_until_ready(reward_forward(features, weight))
    ref = jax.nn.sigmoid(features @ weight)
    assert out.shape == (batch, 1)
    assert jnp.allclose(out, ref, atol=1e-5, rtol=1e-5)

    # 2) Ragged batch: bulk tiles + small tail call (no full-array pad copy).
    batch2 = 200
    features2 = jax.random.normal(k_x2, (batch2, feature_size), dtype=jnp.float32)
    out2 = jax.block_until_ready(reward_forward(features2, weight, tile_b=64))
    ref2 = jax.nn.sigmoid(features2 @ weight)
    assert out2.shape == (batch2, 1)
    assert jnp.allclose(out2, ref2, atol=1e-5, rtol=1e-5)

    # 3) Batch not a multiple of 8: exercises the padded-tail path.
    batch3 = 13
    features3 = jax.random.normal(k_x3, (batch3, feature_size), dtype=jnp.float32)
    out3 = jax.block_until_ready(reward_forward(features3, weight, tile_b=64))
    ref3 = jax.nn.sigmoid(features3 @ weight)
    assert out3.shape == (batch3, 1)
    assert jnp.allclose(out3, ref3, atol=1e-5, rtol=1e-5)

    print("KERNEL_OK")
</pallas_src>

<mosaic_0001>
module attributes {stable_mosaic.version = 11 : i64} {
  func.func @_reward_kernel(%arg0: i32, %arg1: memref<8x768xf32, #tpu.memory_space<vmem>>, %arg2: memref<1x768xf32, #tpu.memory_space<vmem>>, %arg3: memref<8x1xf32, #tpu.memory_space<vmem>>) attributes {dimension_semantics = [#tpu.dimension_semantics<parallel>], iteration_bounds = array<i64: 1>, scalar_prefetch = 0 : i64, scratch_operands = 0 : i64, tpu.core_type = #tpu.core_type<tc>, window_params = [{transform_indices = @transform_0, window_bounds = array<i64: 8, 768>}, {pipeline_mode = #tpu.pipeline_mode<synchronous>, transform_indices = @transform_1, window_bounds = array<i64: 1, 768>}, {transform_indices = @transform_2, window_bounds = array<i64: 8, 1>}]} {
    %c0 = arith.constant 0 : index
    %c0_0 = arith.constant 0 : index
    %0 = vector.load %arg1[%c0, %c0_0] : memref<8x768xf32, #tpu.memory_space<vmem>>, vector<8x768xf32>
    %c0_1 = arith.constant 0 : index
    %c0_2 = arith.constant 0 : index
    %1 = vector.load %arg2[%c0_1, %c0_2] : memref<1x768xf32, #tpu.memory_space<vmem>>, vector<1x768xf32>
    %2 = vector.broadcast %1 : vector<1x768xf32> to vector<8x768xf32>
    %3 = arith.mulf %0, %2 : vector<8x768xf32>
    %cst = arith.constant dense<0.000000e+00> : vector<8xf32>
    %4 = vector.multi_reduction <add>, %3, %cst [1] : vector<8x768xf32> to vector<8xf32>
    %5 = vector.shape_cast %4 : vector<8xf32> to vector<8x1xf32>
    %6 = arith.negf %5 : vector<8x1xf32>
    %7 = math.exp %6 : vector<8x1xf32>
    %cst_3 = arith.constant 1.000000e+00 : f32
    %8 = vector.broadcast %cst_3 : f32 to vector<8x1xf32>
    %9 = arith.addf %8, %7 : vector<8x1xf32>
    %10 = arith.divf %8, %9 : vector<8x1xf32>
    %c0_4 = arith.constant 0 : index
    %c0_5 = arith.constant 0 : index
    %11 = vector.load %arg3[%c0_4, %c0_5] : memref<8x1xf32, #tpu.memory_space<vmem>>, vector<8x1xf32>
    tpu.vector_store %arg3[%c0_4, %c0_5], %10 {strides = array<i32>} : memref<8x1xf32, #tpu.memory_space<vmem>>, vector<8x1xf32>,
    return
  }
  func.func @transform_0(%arg0: i32) -> (i32, i32) {
    %c0_i32 = arith.constant 0 : i32
    %c0_i32_0 = arith.constant 0 : i32
    return %arg0, %c0_i32 : i32, i32
  }
  func.func @transform_1(%arg0: i32) -> (i32, i32) {
    %c0_i32 = arith.constant 0 : i32
    %c0_i32_0 = arith.constant 0 : i32
    %c0_i32_1 = arith.constant 0 : i32
    return %c0_i32, %c0_i32_0 : i32, i32
  }
  func.func @transform_2(%arg0: i32) -> (i32, i32) {
    %c0_i32 = arith.constant 0 : i32
    %c0_i32_0 = arith.constant 0 : i32
    return %arg0, %c0_i32 : i32, i32
  }
}

</mosaic_0001>

<bundles_post_ra>
// kernel: tpu_custom_call.1
= control target key start
LH: loop header
LB: loop body
LE: loop exit
PB: predicated region body
PF: predicated region fallthrough
CT: control target
= control target key end

     0   :  { %7 = vsyncpa [#allocation3], 0  ;;  %s177_s0 = inlined_call_operand.hbm [shape: f32[8,768], index: 0, kind: input, shape index: {}]   ;;  %s178_s1 = inlined_call_operand.hbm [shape: f32[1,768], index: 1, kind: input, shape index: {}]   ;;  %s179_s2 = inlined_call_operand.vmem [shape: f32[8,1], index: 2, kind: output, shape index: {}]  }
   0x1   :  { %8 = vsyncpa [#allocation5], 0  ;;  %s151_s9 = smov [#allocation2]   ;;  %s152_s11 = smov [#allocation4]  }
   0x2   :  { %s15_s10 = sshll.u32 %s151_s9, 4  ;;  %s25_s12 = sshll.u32 %s152_s11, 4  ;;  %s16_s10 = int_to_ptr.vmem [resolvable:$true] %s15_s10  ;;  %s26_s12 = int_to_ptr.vmem [resolvable:$true] %s25_s12 }
   0x3   :  { %s115_s13 = scalar_lea.vmem %s16_s10, 768  ;;  %p120_p1 = scmp.lt.s32.totalorder %s16_s10, %s16_s10 }
   0x4   :  { %p116_p0 = scmp.ne.s32.totalorder %s16_s10, %s115_s13  ;;  %p121_p2 = scmp.lt.s32.totalorder %s115_s13, %s115_s13 }
   0x6   :  { %p122_p3 = por %p121_p2, %p120_p1 }
   0x8   :  { %p123_p4 = pnand %p122_p3, %p116_p0 }
   0xa   :  { %126 = shalt.err (!%p123_p4)
}
   0xb   :  { %18 = dma.hbm_to_vmem [thread:$0]  %s177_s0, 768, %s16_s10, [#allocation3]  }
   0xc   :  { %s135_s16 = scalar_lea.vmem %s26_s12, 96  ;;  %p140_p6 = scmp.lt.s32.totalorder %s26_s12, %s26_s12 }
   0xd   :  { %p136_p5 = scmp.ne.s32.totalorder %s26_s12, %s135_s16  ;;  %p141_p7 = scmp.lt.s32.totalorder %s135_s16, %s135_s16 }
   0xf   :  { %p142_p8 = por %p141_p7, %p140_p6 }
  0x11   :  { %p143_p9 = pnand %p142_p8, %p136_p5 }
  0x13   :  { %146 = shalt.err (!%p143_p9)
}
  0x14   :  { %28 = dma.hbm_to_vmem [thread:$0]  %s178_s1, 96, %s26_s12, [#allocation5]  }
  0x15   :  { %147 = dma.done.wait [#allocation3], 768  }
  0x16   :  { %148 = vsyncadd [#allocation3], 4294966528 }
  0x17   :  { %149 = dma.done.wait [#allocation5], 96  }
  0x18   :  { %150 = vsyncadd [#allocation5], 4294967200  ;;  %v43_v0 = vlaneseq  ;;  %v35_v6 = vld [vmem:[#allocation2] sm:$0xff]  ;;  %v36_v8 = vld [vmem:[#allocation2 + $0x8] sm:$0xff]  ;;  %vm92_vm0 = vcmask 7168  }
  0x19   :  { %v37_v9 = vld [vmem:[#allocation2 + $0x10] sm:$0xff]  ;;  %v38_v16 = vld [vmem:[#allocation2 + $0x18] sm:$0xff]  ;;  %v39_v21 = vld [vmem:[#allocation2 + $0x20] sm:$0xff] }
  0x1a   :  { %v44_v1 = vshrl.u32 %v43_v0, 7  ;;  %v41_v10 = vld [vmem:[#allocation4] sm:$0x3f]  ;;  %v40_v25 = vld [vmem:[#allocation2 + $0x28] sm:$0xff] }
  0x1c   :  { %v45_v2 = vsub.s32 0, %v44_v1  ;;  %v49_v3 = vsub.s32 1, %v44_v1  ;;  %v53_v4 = vsub.s32 2, %v44_v1  ;;  %v57_v5 = vsub.s32 3, %v44_v1 }
  0x1d   :  { %v61_v7 = vsub.s32 4, %v44_v1  ;;  %v65_v11 = vsub.s32 5, %v44_v1 }
  0x1e   :  { %v46_v12 = vrot.slane %v41_v10, %v45_v2  ;;  %v50_v13 = vrot.slane %v41_v10, %v49_v3  ;;  %v54_v14 = vrot.slane %v41_v10, %v53_v4  ;;  %v58_v15 = vrot.slane %v41_v10, %v57_v5 }
  0x1f   :  { %v62_v17 = vrot.slane %v41_v10, %v61_v7  ;;  %v66_v22 = vrot.slane %v41_v10, %v65_v11 }
  0x20   :  { %v73_v18 = vmul.f32 %v46_v12, %v35_v6  ;;  %v74_v19 = vmul.f32 %v50_v13, %v36_v8  ;;  %v75_v20 = vmul.f32 %v54_v14, %v37_v9  ;;  %v76_v23 = vmul.f32 %v58_v15, %v38_v16 }
  0x21   :  { %v77_v26 = vmul.f32 %v62_v17, %v39_v21  ;;  %v78_v28 = vmul.f32 %v66_v22, %v40_v25 }
  0x22   :  { %v79_v24 = vadd.f32 %v74_v19, %v73_v18 }
  0x24   :  { %v80_v27 = vadd.f32 %v79_v24, %v75_v20 }
  0x26   :  { %v81_v29 = vadd.f32 %v80_v27, %v76_v23 }
  0x28   :  { %v82_v30 = vadd.f32 %v81_v29, %v77_v26 }
  0x2a   :  { %v83_v31 = vadd.f32 %v82_v30, %v78_v28 }
  0x2c   :  { %84 = vadd.xlane.f32.xlu0 %v83_v31 }
  0xb5   :  { %v85_v32 = vpop.xlane.xlu0 %84 }
  0xb6   :  { %v100_v33 = vmul.f32 -1.442695, %v85_v32 }
  0xb8   :  { %103 = vpow2.f32 %v100_v33 }
  0xc5   :  { %v104_v34 = vpop.eup %103 }
  0xc6   :  { %v89_v35 = vadd.f32 1.0, %v104_v34 }
  0xc8   :  { %105 = vrcp.f32 %v89_v35 }
  0xd5   :  { %v106_v36 = vpop.eup %105 }
  0xd6   :  { %93 = vst.msk [vmem:[%s179_s2] sm:$0xff] %vm92_vm0, %v106_v36 }
  0xd7   :  { %98 = vsyncpa [#allocation3], 1 }
  0xd8   :  { %99 = vsyncpa [#allocation5], 1 }

</bundles_post_ra>
